<compile_context>
chip_gen: v7x
topology: tpu7x:2x2x1
jax: 0.10.0
libtpu: 0.0.40
codegen_flags: <defaults>
</compile_context>

<pallas_src>
import functools

import jax
import jax.numpy as jnp
import numpy as np
from jax.experimental import pallas as pl
from jax.experimental.pallas import tpu as pltpu


DEFAULT_TILE_B = 4096   # batch tile; ~a few MiB of VMEM incl. double-buffering
MIN_ROWS_FOR_TWO_TILES = 512  # force >=2 tiles above this so v7x uses both TCs


def _round_up(x, m):
    return (x + m - 1) // m * m


def _default_bf16_activations():
    """bf16 tanh path only where the VPU/EUP handle bf16 natively (v6e/v7x)."""
    try:
        kind = jax.devices()[0].device_kind.lower()
    except Exception:
        return False
    if "tpu" not in kind:
        return False
    if any(v in kind for v in ("v2", "v3", "v4", "v5")):
        return False  # f32 is the fast VPU/EUP path on these chips
    return True


def _choose_tiling(batch, tile_b):
    """Balanced batch tiling: (tile_rows, num_tiles, padded_rows)."""
    rows = _round_up(max(batch, 1), 8)
    max_tile = min(_round_up(tile_b, 8), rows)
    num_tiles = pl.cdiv(batch, max_tile)
    # Give the single "parallel" grid axis >= 2 steps for large batches so it
    # can shard across both TensorCores on v7x (harmless extra step on 1-TC chips).
    if batch >= MIN_ROWS_FOR_TWO_TILES and num_tiles < 2:
        num_tiles = 2
    tile_rows = _round_up(pl.cdiv(batch, num_tiles), 8)
    num_tiles = pl.cdiv(batch, tile_rows)
    return tile_rows, num_tiles, num_tiles * tile_rows


# ----------------------------- Pallas kernel ------------------------------ #
def actor_kernel(x_ref, w1_ref, b1_ref, w2_ref, b2_ref, w3_ref, b3_ref,
                 mean_ref, *, act_dtype):
    """Fused 3-layer MLP for one batch tile.

    MXU matmuls take bf16 operands and accumulate in f32.  Bias-add is f32;
    tanh runs in `act_dtype` (bf16 on v6e/v7x, f32 on v5e).  The output block
    is the un-padded (tile_b, action_dim) slab.
    """
    x = x_ref[...].astype(jnp.bfloat16)

    h1 = jnp.dot(x, w1_ref[...], preferred_element_type=jnp.float32) + b1_ref[...]
    h1 = jnp.tanh(h1.astype(act_dtype)).astype(jnp.bfloat16)

    h2 = jnp.dot(h1, w2_ref[...], preferred_element_type=jnp.float32) + b2_ref[...]
    h2 = jnp.tanh(h2.astype(act_dtype)).astype(jnp.bfloat16)

    mean = jnp.dot(h2, w3_ref[...], preferred_element_type=jnp.float32) + b3_ref[...]
    mean_ref[...] = mean.astype(mean_ref.dtype)


# ---------------------- one-time parameter preparation --------------------- #
def prepare_actor_params(params):
    """Hoist per-call prep out of the forward: bf16 weight casts, bias
    reshapes, and the obs-independent std = exp(log_std)."""
    w1, b1, w2, b2, w3, b3, log_std = params
    return {
        "w1": w1.astype(jnp.bfloat16),
        "b1": b1.reshape(1, -1).astype(jnp.float32),
        "w2": w2.astype(jnp.bfloat16),
        "b2": b2.reshape(1, -1).astype(jnp.float32),
        "w3": w3.astype(jnp.bfloat16),
        "b3": b3.reshape(1, -1).astype(jnp.float32),
        "std": jnp.exp(log_std).astype(jnp.float32),
    }


# ------------------------------- forward ----------------------------------- #
@functools.partial(jax.jit, static_argnames=("tile_b", "bf16_activations"))
def actor_forward_prepared(obs, prepared, tile_b=DEFAULT_TILE_B,
                           bf16_activations=False):
    """Returns (mean, std) exactly like Actor.forward.

    obs:  (B, obs_dim) float32
    mean: (B, action_dim) float32
    std:  (action_dim,) float32
    """
    w1, b1 = prepared["w1"], prepared["b1"]
    w2, b2 = prepared["w2"], prepared["b2"]
    w3, b3 = prepared["w3"], prepared["b3"]

    B, obs_dim = obs.shape
    h1_dim = w1.shape[1]
    h2_dim = w2.shape[1]
    action_dim = w3.shape[1]

    tile_rows, num_tiles, b_pad = _choose_tiling(B, tile_b)
    obs_p = obs if b_pad == B else jnp.pad(obs, ((0, b_pad - B), (0, 0)))

    cost = pl.CostEstimate(
        flops=2 * b_pad * (obs_dim * h1_dim + h1_dim * h2_dim
                           + h2_dim * action_dim),
        transcendentals=b_pad * (h1_dim + h2_dim),
        bytes_accessed=(b_pad * (obs_dim + action_dim) * 4
                        + (obs_dim * h1_dim + h1_dim * h2_dim
                           + h2_dim * action_dim) * 2
                        + (h1_dim + h2_dim + action_dim) * 4),
    )

    act_dtype = jnp.bfloat16 if bf16_activations else jnp.float32
    kernel = functools.partial(actor_kernel, act_dtype=act_dtype)

    const = lambda i: (0, 0)  # weights/biases stay resident across the grid
    mean_p = pl.pallas_call(
        kernel,
        out_shape=jax.ShapeDtypeStruct((b_pad, action_dim), jnp.float32),
        grid=(num_tiles,),
        in_specs=[
            pl.BlockSpec((tile_rows, obs_dim), lambda i: (i, 0)),
            pl.BlockSpec((obs_dim, h1_dim), const),
            pl.BlockSpec((1, h1_dim), const),
            pl.BlockSpec((h1_dim, h2_dim), const),
            pl.BlockSpec((1, h2_dim), const),
            pl.BlockSpec((h2_dim, action_dim), const),
            pl.BlockSpec((1, action_dim), const),
        ],
        out_specs=pl.BlockSpec((tile_rows, action_dim), lambda i: (i, 0)),
        compiler_params=pltpu.CompilerParams(
            dimension_semantics=("parallel",)),
        cost_estimate=cost,
    )(obs_p, w1, b1, w2, b2, w3, b3)

    mean = mean_p if b_pad == B else mean_p[:B]
    return mean, prepared["std"]


def actor_forward(obs, params, tile_b=DEFAULT_TILE_B, bf16_activations=None):
    """Convenience wrapper: prep params on the fly (prefer prepare_actor_params
    once + actor_forward_prepared in a training loop)."""
    if bf16_activations is None:
        bf16_activations = _default_bf16_activations()
    return actor_forward_prepared(obs, prepare_actor_params(params),
                                  tile_b=tile_b,
                                  bf16_activations=bf16_activations)


# --------------------------- parameter init -------------------------------- #
def orthogonal_init(key, in_dim, out_dim, gain):
    """Orthogonal init matching torch.nn.init.orthogonal_ semantics.

    PyTorch stores weight as (out, in); we store (in, out), i.e. the transpose
    of an orthogonal matrix (still orthogonal)."""
    a = jax.random.normal(key, (max(in_dim, out_dim), min(in_dim, out_dim)),
                          dtype=jnp.float32)
    q, r = jnp.linalg.qr(a)
    q = q * jnp.sign(jnp.diag(r))[None, :]
    w = q if in_dim >= out_dim else q.T   # (in, out)
    return gain * w


def make_actor_params(key, obs_dim, action_dim, hidden_sizes=(64, 64),
                      log_std_init=0.0):
    # The PyTorch spec applies gain=sqrt(2) to every Linear (incl. the head).
    gain = np.sqrt(2.0)
    sizes = [obs_dim, *hidden_sizes, action_dim]
    keys = jax.random.split(key, len(sizes) - 1)
    params = []
    for i in range(len(sizes) - 1):
        w = orthogonal_init(keys[i], sizes[i], sizes[i + 1], gain)
        b = jnp.zeros((sizes[i + 1],), dtype=jnp.float32)
        params.extend([w, b])
    log_std = jnp.full((action_dim,), log_std_init, dtype=jnp.float32)
    params.append(log_std)
    return tuple(params)


# ------------------------------ references --------------------------------- #
def actor_forward_ref_f32(obs, params):
    w1, b1, w2, b2, w3, b3, log_std = params
    h = jnp.tanh(obs @ w1 + b1)
    h = jnp.tanh(h @ w2 + b2)
    return h @ w3 + b3, jnp.exp(log_std)


def actor_forward_ref_matched(obs, params, act_dtype):
    """Reference mimicking the kernel's bf16-operand / f32-accumulate matmuls
    and the chip-dependent tanh dtype."""
    w1, b1, w2, b2, w3, b3, log_std = params
    bf = jnp.bfloat16
    h = jnp.dot(obs.astype(bf), w1.astype(bf),
                preferred_element_type=jnp.float32) + b1
    h = jnp.tanh(h.astype(act_dtype)).astype(bf)
    h = jnp.dot(h, w2.astype(bf), preferred_element_type=jnp.float32) + b2
    h = jnp.tanh(h.astype(act_dtype)).astype(bf)
    mean = jnp.dot(h, w3.astype(bf), preferred_element_type=jnp.float32) + b3
    return mean, jnp.exp(log_std)


# --------------------------------- main ------------------------------------ #
if __name__ == "__main__":
    key = jax.random.PRNGKey(0)
    k_obs, k_params, k_obs2 = jax.random.split(key, 3)

    batch, obs_dim, action_dim = 8, 32, 8
    obs = jax.random.normal(k_obs, (batch, obs_dim), dtype=jnp.float32)
    params = make_actor_params(k_params, obs_dim, action_dim,
                               hidden_sizes=(64, 64), log_std_init=0.0)

    bf16_act = _default_bf16_activations()
    act_dtype = jnp.bfloat16 if bf16_act else jnp.float32
    prepared = prepare_actor_params(params)   # one-time weight prep

    # --- small-batch run (single tile path) ---
    mean, std = actor_forward_prepared(obs, prepared,
                                       bf16_activations=bf16_act)
    jax.block_until_ready((mean, std))

    mean_match, _ = actor_forward_ref_matched(obs, params, act_dtype)
    mean_f32, std_ref = actor_forward_ref_f32(obs, params)

    np.testing.assert_allclose(np.asarray(mean), np.asarray(mean_match),
                               rtol=2e-3, atol=2e-3)
    np.testing.assert_allclose(np.asarray(mean), np.asarray(mean_f32),
                               rtol=5e-2, atol=5e-2)
    np.testing.assert_allclose(np.asarray(std), np.asarray(std_ref),
                               rtol=1e-6, atol=1e-6)
    assert mean.shape == (batch, action_dim)
    assert std.shape == (action_dim,)

    # --- multi-tile run (exercises grid, balanced tiling, parallel axis) ---
    batch2 = 520   # -> 2 balanced tiles of 264 rows (was 2x512 with padding)
    obs2 = jax.random.normal(k_obs2, (batch2, obs_dim), dtype=jnp.float32)
    mean2, std2 = actor_forward_prepared(obs2, prepared,
                                         bf16_activations=bf16_act)
    jax.block_until_ready((mean2, std2))

    mean2_match, _ = actor_forward_ref_matched(obs2, params, act_dtype)
    np.testing.assert_allclose(np.asarray(mean2), np.asarray(mean2_match),
                               rtol=2e-3, atol=2e-3)
    assert mean2.shape == (batch2, action_dim)
    assert std2.shape == (action_dim,)

    print("KERNEL_OK")
</pallas_src>

<mosaic_0001>
module attributes {stable_mosaic.version = 11 : i64} {
  func.func @actor_kernel(%arg0: i32, %arg1: memref<8x32xf32, #tpu.memory_space<vmem>>, %arg2: memref<32x64xbf16, #tpu.memory_space<vmem>>, %arg3: memref<1x64xf32, #tpu.memory_space<vmem>>, %arg4: memref<64x64xbf16, #tpu.memory_space<vmem>>, %arg5: memref<1x64xf32, #tpu.memory_space<vmem>>, %arg6: memref<64x8xbf16, #tpu.memory_space<vmem>>, %arg7: memref<1x8xf32, #tpu.memory_space<vmem>>, %arg8: memref<8x8xf32, #tpu.memory_space<vmem>>) attributes {dimension_semantics = [#tpu.dimension_semantics<parallel>], iteration_bounds = array<i64: 1>, scalar_prefetch = 0 : i64, scratch_operands = 0 : i64, tpu.core_type = #tpu.core_type<tc>, window_params = [{transform_indices = @transform_0, window_bounds = array<i64: 8, 32>}, {pipeline_mode = #tpu.pipeline_mode<synchronous>, transform_indices = @transform_1, window_bounds = array<i64: 32, 64>}, {pipeline_mode = #tpu.pipeline_mode<synchronous>, transform_indices = @transform_2, window_bounds = array<i64: 1, 64>}, {pipeline_mode = #tpu.pipeline_mode<synchronous>, transform_indices = @transform_3, window_bounds = array<i64: 64, 64>}, {pipeline_mode = #tpu.pipeline_mode<synchronous>, transform_indices = @transform_4, window_bounds = array<i64: 1, 64>}, {pipeline_mode = #tpu.pipeline_mode<synchronous>, transform_indices = @transform_5, window_bounds = array<i64: 64, 8>}, {pipeline_mode = #tpu.pipeline_mode<synchronous>, transform_indices = @transform_6, window_bounds = array<i64: 1, 8>}, {transform_indices = @transform_7, window_bounds = array<i64: 8, 8>}]} {
    %c0 = arith.constant 0 : index
    %c0_0 = arith.constant 0 : index
    %0 = vector.load %arg1[%c0, %c0_0] : memref<8x32xf32, #tpu.memory_space<vmem>>, vector<8x32xf32>
    %1 = arith.truncf %0 : vector<8x32xf32> to vector<8x32xbf16>
    %c0_1 = arith.constant 0 : index
    %c0_2 = arith.constant 0 : index
    %2 = vector.load %arg2[%c0_1, %c0_2] : memref<32x64xbf16, #tpu.memory_space<vmem>>, vector<32x64xbf16>
    %cst = arith.constant dense<0.000000e+00> : vector<8x64xf32>
    %3 = tpu.matmul %1, %2, %cst {dimension_numbers = #tpu.dot_dimension_numbers<[1], [0], [0], [1], [0, 0, 1, 1], [], []>} : vector<8x32xbf16>, vector<32x64xbf16>, vector<8x64xf32> -> vector<8x64xf32>
    %c0_3 = arith.constant 0 : index
    %c0_4 = arith.constant 0 : index
    %4 = vector.load %arg3[%c0_3, %c0_4] : memref<1x64xf32, #tpu.memory_space<vmem>>, vector<1x64xf32>
    %5 = vector.broadcast %4 : vector<1x64xf32> to vector<8x64xf32>
    %6 = arith.addf %3, %5 : vector<8x64xf32>
    %7 = math.tanh %6 : vector<8x64xf32>
    %8 = arith.truncf %7 : vector<8x64xf32> to vector<8x64xbf16>
    %c0_5 = arith.constant 0 : index
    %c0_6 = arith.constant 0 : index
    %9 = vector.load %arg4[%c0_5, %c0_6] : memref<64x64xbf16, #tpu.memory_space<vmem>>, vector<64x64xbf16>
    %cst_7 = arith.constant dense<0.000000e+00> : vector<8x64xf32>
    %10 = tpu.matmul %8, %9, %cst_7 {dimension_numbers = #tpu.dot_dimension_numbers<[1], [0], [0], [1], [0, 0, 1, 1], [], []>} : vector<8x64xbf16>, vector<64x64xbf16>, vector<8x64xf32> -> vector<8x64xf32>
    %c0_8 = arith.constant 0 : index
    %c0_9 = arith.constant 0 : index
    %11 = vector.load %arg5[%c0_8, %c0_9] : memref<1x64xf32, #tpu.memory_space<vmem>>, vector<1x64xf32>
    %12 = vector.broadcast %11 : vector<1x64xf32> to vector<8x64xf32>
    %13 = arith.addf %10, %12 : vector<8x64xf32>
    %14 = math.tanh %13 : vector<8x64xf32>
    %15 = arith.truncf %14 : vector<8x64xf32> to vector<8x64xbf16>
    %c0_10 = arith.constant 0 : index
    %c0_11 = arith.constant 0 : index
    %16 = vector.load %arg6[%c0_10, %c0_11] : memref<64x8xbf16, #tpu.memory_space<vmem>>, vector<64x8xbf16>
    %cst_12 = arith.constant dense<0.000000e+00> : vector<8x8xf32>
    %17 = tpu.matmul %15, %16, %cst_12 {dimension_numbers = #tpu.dot_dimension_numbers<[1], [0], [0], [1], [0, 0, 1, 1], [], []>} : vector<8x64xbf16>, vector<64x8xbf16>, vector<8x8xf32> -> vector<8x8xf32>
    %c0_13 = arith.constant 0 : index
    %c0_14 = arith.constant 0 : index
    %18 = vector.load %arg7[%c0_13, %c0_14] : memref<1x8xf32, #tpu.memory_space<vmem>>, vector<1x8xf32>
    %19 = vector.broadcast %18 : vector<1x8xf32> to vector<8x8xf32>
    %20 = arith.addf %17, %19 : vector<8x8xf32>
    %c0_15 = arith.constant 0 : index
    %c0_16 = arith.constant 0 : index
    %21 = vector.load %arg8[%c0_15, %c0_16] : memref<8x8xf32, #tpu.memory_space<vmem>>, vector<8x8xf32>
    tpu.vector_store %arg8[%c0_15, %c0_16], %20 {strides = array<i32>} : memref<8x8xf32, #tpu.memory_space<vmem>>, vector<8x8xf32>,
    return
  }
  func.func @transform_0(%arg0: i32) -> (i32, i32) {
    %c0_i32 = arith.constant 0 : i32
    %c0_i32_0 = arith.constant 0 : i32
    return %arg0, %c0_i32 : i32, i32
  }
  func.func @transform_1(%arg0: i32) -> (i32, i32) {
    %c0_i32 = arith.constant 0 : i32
    %c0_i32_0 = arith.constant 0 : i32
    %c0_i32_1 = arith.constant 0 : i32
    return %c0_i32, %c0_i32_0 : i32, i32
  }
  func.func @transform_2(%arg0: i32) -> (i32, i32) {
    %c0_i32 = arith.constant 0 : i32
    %c0_i32_0 = arith.constant 0 : i32
    %c0_i32_1 = arith.constant 0 : i32
    return %c0_i32, %c0_i32_0 : i32, i32
  }
  func.func @transform_3(%arg0: i32) -> (i32, i32) {
    %c0_i32 = arith.constant 0 : i32
    %c0_i32_0 = arith.constant 0 : i32
    %c0_i32_1 = arith.constant 0 : i32
    return %c0_i32, %c0_i32_0 : i32, i32
  }
  func.func @transform_4(%arg0: i32) -> (i32, i32) {
    %c0_i32 = arith.constant 0 : i32
    %c0_i32_0 = arith.constant 0 : i32
    %c0_i32_1 = arith.constant 0 : i32
    return %c0_i32, %c0_i32_0 : i32, i32
  }
  func.func @transform_5(%arg0: i32) -> (i32, i32) {
    %c0_i32 = arith.constant 0 : i32
    %c0_i32_0 = arith.constant 0 : i32
    %c0_i32_1 = arith.constant 0 : i32
    return %c0_i32, %c0_i32_0 : i32, i32
  }
  func.func @transform_6(%arg0: i32) -> (i32, i32) {
    %c0_i32 = arith.constant 0 : i32
    %c0_i32_0 = arith.constant 0 : i32
    %c0_i32_1 = arith.constant 0 : i32
    return %c0_i32, %c0_i32_0 : i32, i32
  }
  func.func @transform_7(%arg0: i32) -> (i32, i32) {
    %c0_i32 = arith.constant 0 : i32
    %c0_i32_0 = arith.constant 0 : i32
    return %arg0, %c0_i32 : i32, i32
  }
}

</mosaic_0001>

<bundles_post_ra>
// kernel: actor_forward_prepared.1
= control target key start
LH: loop header
LB: loop body
LE: loop exit
PB: predicated region body
PF: predicated region fallthrough
CT: control target
= control target key end

     0   :  { %12 = vsyncpa [#allocation3], 0  ;;  %s534_s0 = inlined_call_operand.vmem [shape: f32[8,32], index: 0, kind: input, shape index: {}]   ;;  %s535_s1 = inlined_call_operand.hbm [shape: bf16[32,64], index: 1, kind: input, shape index: {}]   ;;  %s536_s2 = inlined_call_operand.vmem [shape: f32[1,64], index: 2, kind: input, shape index: {}]   ;;  %s537_s3 = inlined_call_operand.vmem [shape: bf16[64,64], index: 3, kind: input, shape index: {}]   ;;  %s538_s4 = inlined_call_operand.vmem [shape: f32[1,64], index: 4, kind: input, shape index: {}]   ;;  %s539_s5 = inlined_call_operand.vmem [shape: bf16[64,8], index: 5, kind: input, shape index: {}]   ;;  %s540_s6 = inlined_call_operand.vmem [shape: f32[1,8], index: 6, kind: input, shape index: {}]   ;;  %s541_s7 = inlined_call_operand.hbm [shape: f32[8,8], index: 7, kind: output, shape index: {}]  }
   0x1   :  { %13 = vsyncpa [#allocation4], 0  ;;  %s426_s24 = smov [#allocation2]   ;;  %s378_s28 = scalar_lea.hbm %s535_s1, 256 }
   0x2   :  { %s21_s25 = sshll.u32 %s426_s24, 4  ;;  %p379_p0 = scmp.ne.s32.totalorder %s535_s1, %s378_s28  ;;  %s22_s25 = int_to_ptr.vmem [resolvable:$true] %s21_s25 }
   0x3   :  { %p382_p1 = scmp.lt.u32.totalorder %s378_s28, %s535_s1 }
   0x5   :  { %p384_p2 = pnand %p382_p1, %p379_p0 }
   0x7   :  { %387 = shalt.err (!%p384_p2)
}
   0x8   :  { %s388_s10 = scalar_lea.vmem %s22_s25, 256  ;;  %p393_p4 = scmp.lt.s32.totalorder %s22_s25, %s22_s25 }
   0x9   :  { %p389_p3 = scmp.ne.s32.totalorder %s22_s25, %s388_s10  ;;  %p394_p5 = scmp.lt.s32.totalorder %s388_s10, %s388_s10 }
   0xb   :  { %p395_p6 = por %p394_p5, %p393_p4 }
   0xd   :  { %p396_p7 = pnand %p395_p6, %p389_p3 }
   0xf   :  { %399 = shalt.err (!%p396_p7)
}
  0x10   :  { %s427_s11 = smov 64   ;;  %s428_s12 = smov 4  }
  0x11   :  { %27 = dma.hbm_to_vmem [thread:$0]  %s535_s1, 256, %s22_s25, [#allocation3], %s427_s11, %s427_s11, %s428_s12  }
  0x12   :  { %422 = dma.done.wait [#allocation3], 256  }
  0x13   :  { %423 = vsyncadd [#allocation3], 4294967040  ;;  %v429_v0 = vmov 0.0   ;;  %vm430_vm0 = vmmov 0   ;;  %v364_v1 = vld [vmem:[#allocation2] sm:$0xff]   ;;  %v365_v2 = vld [vmem:[#allocation2 + $0x8] sm:$0xff]  }
  0x14   :  { %326 = vmatprep.subr.bf16.mxu0 %v429_v0  ;;  %330 = vmatprep.mubr.msk.bf16.mxu0 %vm430_vm0, %v429_v0  ;;  %v42_v3 = vld [vmem:[%s534_s0] sm:$0xff]  ;;  %vm67_vm1 = vcmask 261120   ;;  %v367_v6 = vld [vmem:[%s537_s3 + $0x8] sm:$0xff]   ;;  %v368_v7 = vld [vmem:[%s537_s3 + $0x10] sm:$0xff]   ;;  %vm152_vm2 = vcmask 523264   ;;  %vm280_vm3 = vcmask 64512  }
  0x15   :  { %334 = vmatprep.subr.bf16.mxu1 %v429_v0  ;;  %342 = vmatprep.mubr.msk.bf16.mxu1 %vm430_vm0, %v429_v0  ;;  %v43_v4 = vpack.c.bf16 %v42_v3, %v42_v3  ;;  %v366_v5 = vld [vmem:[%s537_s3] sm:$0xff]   ;;  %v369_v8 = vld [vmem:[%s537_s3 + $0x18] sm:$0xff]   ;;  %v371_v18 = vld [vmem:[%s539_s5 + $0x8] sm:$0xff]  }
  0x16   :  { %327 = vmatpush3.bf16.msra.mxu0 %v364_v1  ;;  %335 = vmatpush3.bf16.msra.mxu1 %v366_v5  ;;  %v297_v9 = vld [vmem:[%s536_s2] ss:$0 sm:$0xff]  ;;  %v372_v19 = vld [vmem:[%s539_s5 + $0x10] sm:$0xff]   ;;  %v373_v20 = vld [vmem:[%s539_s5 + $0x18] sm:$0xff]  }
  0x17   :  { %328 = vmatprep.subr.bf16.mxu0 %v429_v0  ;;  %336 = vmatprep.subr.bf16.mxu1 %v429_v0  ;;  %v370_v17 = vld [vmem:[%s539_s5] sm:$0xff]   ;;  %s431_s5 = smov [#allocation5]  }
  0x18   :  { %v301_v21 = vld [vmem:[%s538_s4] ss:$0 sm:$0xff]  ;;  %s288_s12 = sshll.u32 %s431_s5, 4  ;;  %s289_s12 = int_to_ptr.vmem [resolvable:$true] %s288_s12 }
  0x19   :  { %v307_v29 = vld [vmem:[%s540_s6] ss:$0 sm:$0xff]  ;;  %s400_s4 = scalar_lea.vmem %s289_s12, 128  ;;  %p405_p9 = scmp.lt.s32.totalorder %s289_s12, %s289_s12 }
  0x1a   :  { %329 = vmatpush3.bf16.msra.mxu0 %v365_v2  ;;  %337 = vmatpush3.bf16.msra.mxu1 %v367_v6  ;;  %p401_p8 = scmp.ne.s32.totalorder %s289_s12, %s400_s4  ;;  %p406_p10 = scmp.lt.s32.totalorder %s400_s4, %s400_s4 }
  0x1b   :  { %346 = vmatprep.subr.bf16.mxu0 %v429_v0  ;;  %338 = vmatprep.subr.bf16.mxu1 %v429_v0 }
  0x1c   :  { %p407_p11 = por %p406_p10, %p405_p9 }
  0x1d   :  { %331 = vmatmul.mubr.msk.bf16.vlgmr.msra.gmra.mrb[0].mxu0 %vm67_vm1, %v43_v4 }
  0x1e   :  { %354 = vmatprep.mubr.msk.bf16.mxu0 %vm430_vm0, %v429_v0  ;;  %339 = vmatpush3.bf16.msra.mxu1 %v368_v7  ;;  %p408_p12 = pnand %p407_p11, %p401_p8 }
  0x1f   :  { %340 = vmatprep.subr.bf16.mxu1 %v429_v0  ;;  %347 = vmatpush3.bf16.msra.mxu0 %v370_v17 }
  0x20   :  { %348 = vmatprep.subr.bf16.mxu0 %v429_v0 }
  0x22   :  { %341 = vmatpush3.bf16.msra.mxu1 %v369_v8 }
  0x23   :  { %349 = vmatpush3.bf16.msra.mxu0 %v371_v18 }
  0x24   :  { %350 = vmatprep.subr.bf16.mxu0 %v429_v0 }
  0x27   :  { %351 = vmatpush3.bf16.msra.mxu0 %v372_v19 }
  0x28   :  { %352 = vmatprep.subr.bf16.mxu0 %v429_v0 }
  0x2b   :  { %353 = vmatpush3.bf16.msra.mxu0 %v373_v20 }
  0xf0   :  { %v105_v10 = vpop.f32.mrb[0].mxu0 }
  0xf1   :  { %v106_v11 = vadd.f32 %v297_v9, %v105_v10  ;;  %v332_v12 = vpop.f32.mrb[1].mxu0 }
  0xf2   :  { %v108_v13 = vpop.f32.mrb[2].mxu0 }
  0xf3   :  { %374 = vtanh.f32 %v106_v11  ;;  %v333_v14 = vpop.f32.mrb[3].mxu0 }
  0xfd   :  { %v375_v15 = vpop.eup %374 }
  0xfe   :  { %v112_v16 = vpack.c.bf16 %v375_v15, %v375_v15 }
 0x100   :  { %343 = vmatmul.mubr.msk.bf16.vlgmr.msra.gmra.mrb[0].mxu1 %vm152_vm2, %v112_v16 }
 0x1d3   :  { %v190_v22 = vpop.f32.mrb[0].mxu1 }
 0x1d4   :  { %v191_v23 = vadd.f32 %v301_v21, %v190_v22  ;;  %v344_v24 = vpop.f32.mrb[1].mxu1 }
 0x1d5   :  { %v193_v25 = vpop.f32.mrb[2].mxu1 }
 0x1d6   :  { %376 = vtanh.f32 %v191_v23  ;;  %v345_v26 = vpop.f32.mrb[3].mxu1 }
 0x1e0   :  { %v377_v27 = vpop.eup %376 }
 0x1e1   :  { %v197_v28 = vpack.c.bf16 %v377_v27, %v377_v27 }
 0x1e3   :  { %355 = vmatmul.mubr.msk.bf16.vlgmr.msra.gmra.mrb[4].mxu0 %vm152_vm2, %v197_v28 }
 0x2b6   :  { %v274_v30 = vpop.f32.mrb[4].mxu0 }
 0x2b7   :  { %v275_v31 = vadd.f32 %v307_v29, %v274_v30  ;;  %v356_v32 = vpop.f32.mrb[5].mxu0 }
 0x2b8   :  { %v277_v33 = vpop.f32.mrb[6].mxu0 }
 0x2b9   :  { %v357_v34 = vpop.f32.mrb[7].mxu0  ;;  %281 = vst.msk [vmem:[#allocation5] sm:$0xff] %vm280_vm3, %v275_v31 }
 0x2ba   :  { %411 = shalt.err (!%p408_p12)
}
 0x2bb   :  { %s412_s6 = scalar_lea.hbm %s541_s7, 128 }
 0x2bc   :  { %p413_p13 = scmp.ne.s32.totalorder %s541_s7, %s412_s6  ;;  %p416_p0 = scmp.lt.u32.totalorder %s412_s6, %s541_s7 }
 0x2be   :  { %p418_p1 = pnand %p416_p0, %p413_p13 }
 0x2c0   :  { %421 = shalt.err (!%p418_p1)
}
 0x2c1   :  { %291 = dma.vmem_to_hbm [thread:$0]  %s289_s12, 128, %s541_s7, [#allocation4]  }
 0x2c2   :  { %424 = dma.done.wait [#allocation4], 128  }
 0x2c3   :  { %425 = vsyncadd [#allocation4], 4294967168 }
 0x2c4   :  { %295 = vsyncpa [#allocation3], 1 }
 0x2c5   :  { %296 = vsyncpa [#allocation4], 1 }

</bundles_post_ra>
